<compile_context>
chip_gen: v5e
topology: v5e:2x2
jax: 0.10.0
libtpu: 0.0.40
codegen_flags: <defaults>
</compile_context>

<pallas_src>
import jax
import jax.numpy as jnp
from jax import lax
from jax.experimental import pallas as pl
from jax.experimental.pallas import tpu as pltpu


def _round_up(x, m):
    return (x + m - 1) // m * m


def _pad_to(x, target_shape):
    pads = [(0, t - s) for s, t in zip(x.shape, target_shape)]
    if all(p == (0, 0) for p in pads):
        return x
    return jnp.pad(x, pads)


_NT_DIMS = (((1,), (1,)), ((), ()))   # 2-D  x @ y^T  (contract over last dims)


def attend_kernel(a_ref, b_ref, w1_ref, b1_ref, w2_ref, b2_ref,
                  beta_ref, alpha_ref):
    A = a_ref[...]           # (BB, Sa, E)   compute dtype (bf16 or f32)
    B = b_ref[...]           # (BB, Sb, E)
    W1 = w1_ref[...]         # (E,  Hp)      resident weights (H lane-padded)
    b1 = b1_ref[...]         # (1,  Hp)
    W2 = w2_ref[...]         # (Hp, Hp)
    b2 = b2_ref[...]         # (1,  Hp)

    BB, Sa, E = A.shape
    _, Sb, _ = B.shape
    Hp = W1.shape[1]
    cdt = A.dtype            # MXU operand dtype

    def f(X3, S):
        # Fold the batch block into the M dimension so small sequences still
        # fill MXU rows; accumulate in f32, keep MXU operands in input dtype.
        X2 = X3.reshape(BB * S, E)
        h = jnp.dot(X2, W1, preferred_element_type=jnp.float32) + b1
        h = jnp.maximum(h, 0.0).astype(cdt)
        h = jnp.dot(h, W2, preferred_element_type=jnp.float32) + b2
        h = jnp.maximum(h, 0.0).astype(cdt)
        return h.reshape(BB, S, Hp)

    f_A = f(A, Sa)           # (BB, Sa, Hp)
    f_B = f(B, Sb)           # (BB, Sb, Hp)

    # Attention stage per batch element (BB is a small compile-time constant;
    # a batched dot_general would lower to per-batch MXU matmuls anyway).
    # One MXU score contraction per element; e^T comes from an XLU 2-D
    # transpose rather than a second contraction.  Both softmax reductions are
    # lane (last-axis) reductions and both value matmuls are standard NN dots.
    for i in range(BB):
        e = lax.dot_general(f_A[i], f_B[i], _NT_DIMS,
                            preferred_element_type=jnp.float32)  # (Sa, Sb) f32
        et = e.T                                                 # (Sb, Sa) f32 (XLU)

        # softmax(e, axis=-1) @ B  -- normalization applied to the (Sa, E) output.
        m = jnp.max(e, axis=-1, keepdims=True)
        p = jnp.exp(e - m)
        inv_l = pl.reciprocal(jnp.sum(p, axis=-1, keepdims=True), approx=True)
        beta = jnp.dot(p.astype(cdt), B[i], preferred_element_type=jnp.float32)
        beta_ref[i] = (beta * inv_l).astype(beta_ref.dtype)

        # softmax(e^T, axis=-1) @ A  -- normalization applied to the (Sb, E) output.
        mt = jnp.max(et, axis=-1, keepdims=True)
        q = jnp.exp(et - mt)
        inv_lt = pl.reciprocal(jnp.sum(q, axis=-1, keepdims=True), approx=True)
        alpha = jnp.dot(q.astype(cdt), A[i], preferred_element_type=jnp.float32)
        alpha_ref[i] = (alpha * inv_lt).astype(alpha_ref.dtype)


def _vmem_bytes_estimate(BB, Sa, Sb, E, Hp, itemsize):
    f32 = 4
    # double-buffered activation blocks (A, B in; beta, alpha out)
    act = 2 * 2 * BB * (Sa + Sb) * E * itemsize
    # resident weights (double-buffered by the pipeline even with constant maps)
    wts = 2 * ((E + 1) * Hp + (Hp + 1) * Hp) * itemsize
    # MLP hidden activations (compute dtype) + their f32 pre-ReLU temporaries
    hid = BB * (Sa + Sb) * Hp * (itemsize + f32)
    # f32 score block, its transpose and the two exp'd probability matrices
    sco = 4 * BB * Sa * Sb * f32
    return act + wts + hid + sco


def attend(A, B, W1t, b1, W2t, b2, *, block_batch=None, vmem_limit_bytes=None):
    """A: (Bt, Sa, E), B: (Bt, Sb, E); W1t: (E, H), W2t: (H, H); biases (1, H).

    Weights are pre-transposed to (in_features, out_features).  All arrays
    should share a dtype (bf16 recommended); accumulation is f32 in-kernel.
    """
    Bt, Sa, E = A.shape
    Bt2, Sb, E2 = B.shape
    assert Bt2 == Bt and E2 == E
    H = W1t.shape[1]
    out_dtype = A.dtype
    itemsize = jnp.dtype(out_dtype).itemsize

    # Pad only the hidden dim to a lane multiple (weights are tiny & resident).
    # E is deliberately NOT padded: full-dim blocks are legal, and keeping the
    # true E avoids a 4x HBM round trip on A/B/beta/alpha when E << 128.
    Hp = _round_up(H, 128)

    # Generation-aware VMEM budget (64 MiB physical on v7x, 128 MiB v5e/v6e).
    try:
        vmem_phys = pltpu.get_tpu_info().vmem_capacity_bytes
    except Exception:
        vmem_phys = 128 * 1024 * 1024
    vmem_cap = max(16 * 1024 * 1024, int(vmem_phys) * 3 // 4)

    if block_batch is None:
        # Fill >= 512 MXU rows per grid step, but keep >= 2 grid steps so a
        # v7x megacore can shard the batch axis over its two TensorCores, and
        # back off while the per-step VMEM estimate does not fit the budget.
        bb = max(1, min(Bt, pl.cdiv(512, max(Sa, Sb))))
        bb = min(bb, max(1, pl.cdiv(Bt, 2)), 64)
        while bb > 1 and _vmem_bytes_estimate(bb, Sa, Sb, E, Hp, itemsize) > vmem_cap // 2:
            bb = max(1, bb // 2)
        block_batch = bb
    BB = block_batch
    Bt_p = _round_up(Bt, BB)

    if vmem_limit_bytes is None:
        est = _vmem_bytes_estimate(BB, Sa, Sb, E, Hp, itemsize)
        vmem_limit_bytes = min(max(2 * est + (1 << 20), 16 * 1024 * 1024), vmem_cap)

    # Batch padding only (padded batch rows produce finite garbage, sliced off).
    Ap = _pad_to(A, (Bt_p, Sa, E))
    Bp = _pad_to(B, (Bt_p, Sb, E))
    W1p = _pad_to(W1t, (E, Hp))
    b1p = _pad_to(b1.reshape(1, H), (1, Hp))
    W2p = _pad_to(W2t, (Hp, Hp))
    b2p = _pad_to(b2.reshape(1, H), (1, Hp))

    grid = (Bt_p // BB,)

    beta_p, alpha_p = pl.pallas_call(
        attend_kernel,
        grid_spec=pltpu.PrefetchScalarGridSpec(
            num_scalar_prefetch=0,
            grid=grid,
            in_specs=[
                pl.BlockSpec((BB, Sa, E), lambda i: (i, 0, 0)),
                pl.BlockSpec((BB, Sb, E), lambda i: (i, 0, 0)),
                pl.BlockSpec((E, Hp), lambda i: (0, 0)),
                pl.BlockSpec((1, Hp), lambda i: (0, 0)),
                pl.BlockSpec((Hp, Hp), lambda i: (0, 0)),
                pl.BlockSpec((1, Hp), lambda i: (0, 0)),
            ],
            out_specs=[
                pl.BlockSpec((BB, Sa, E), lambda i: (i, 0, 0)),
                pl.BlockSpec((BB, Sb, E), lambda i: (i, 0, 0)),
            ],
        ),
        out_shape=[
            jax.ShapeDtypeStruct((Bt_p, Sa, E), out_dtype),
            jax.ShapeDtypeStruct((Bt_p, Sb, E), out_dtype),
        ],
        compiler_params=pltpu.CompilerParams(
            dimension_semantics=("parallel",),
            vmem_limit_bytes=vmem_limit_bytes,
        ),
    )(Ap, Bp, W1p, b1p, W2p, b2p)

    # Strip batch padding (no E padding to strip anymore).
    return beta_p[:Bt], alpha_p[:Bt]


def attend_reference(A, B, W1t, b1, W2t, b2):
    """Pure-JAX f32 reference of the PyTorch forward (eval mode)."""
    def f(X):
        h = jnp.maximum(X @ W1t + b1, 0.0)
        return jnp.maximum(h @ W2t + b2, 0.0)
    f_A = f(A)
    f_B = f(B)
    e = jnp.einsum('bik,bjk->bij', f_A, f_B)
    beta = jnp.einsum('bij,bjd->bid', jax.nn.softmax(e, axis=-1), B)
    alpha = jnp.einsum('bij,bjd->bid',
                       jax.nn.softmax(jnp.swapaxes(e, 1, 2), axis=-1), A)
    return beta, alpha


if __name__ == "__main__":
    # Small shapes consistent with the module (num_inputs = embed_size, H = num_hiddens).
    batch, seq_a, seq_b, embed, hidden = 5, 8, 16, 32, 32

    key = jax.random.PRNGKey(0)
    k_a, k_b, k_w1, k_b1, k_w2, k_b2 = jax.random.split(key, 6)

    A = jax.random.normal(k_a, (batch, seq_a, embed), dtype=jnp.float32)
    B = jax.random.normal(k_b, (batch, seq_b, embed), dtype=jnp.float32)
    # nn.Linear(E, H): weight (H, E), bias (H,) — stored transposed as (E, H).
    W1t = jax.random.normal(k_w1, (embed, hidden), dtype=jnp.float32) * 0.1
    b1 = jax.random.normal(k_b1, (1, hidden), dtype=jnp.float32) * 0.1
    W2t = jax.random.normal(k_w2, (hidden, hidden), dtype=jnp.float32) * 0.1
    b2 = jax.random.normal(k_b2, (1, hidden), dtype=jnp.float32) * 0.1

    beta_ref, alpha_ref = attend_reference(A, B, W1t, b1, W2t, b2)

    # 1) f32 run (auto block_batch: >=2 grid steps, batch padding exercised).
    beta32, alpha32 = attend(A, B, W1t, b1, W2t, b2)
    beta32, alpha32 = jax.block_until_ready((beta32, alpha32))
    assert jnp.allclose(beta32, beta_ref, atol=5e-3, rtol=5e-3)
    assert jnp.allclose(alpha32, alpha_ref, atol=5e-3, rtol=5e-3)

    # 2) bf16 run: MXU-native operand dtype with f32 accumulation; explicit
    #    block_batch exercises a different grid shape.
    to_bf16 = lambda x: x.astype(jnp.bfloat16)
    beta16, alpha16 = attend(to_bf16(A), to_bf16(B), to_bf16(W1t), to_bf16(b1),
                             to_bf16(W2t), to_bf16(b2), block_batch=2)
    beta16, alpha16 = jax.block_until_ready((beta16, alpha16))
    assert jnp.allclose(beta16.astype(jnp.float32), beta_ref, atol=6e-2, rtol=6e-2)
    assert jnp.allclose(alpha16.astype(jnp.float32), alpha_ref, atol=6e-2, rtol=6e-2)

    print("KERNEL_OK")
</pallas_src>

<mosaic_0001>
module attributes {stable_mosaic.version = 11 : i64} {
  func.func @attend_kernel(%arg0: i32, %arg1: memref<3x8x32xf32, #tpu.memory_space<vmem>>, %arg2: memref<3x16x32xf32, #tpu.memory_space<vmem>>, %arg3: memref<32x128xf32, #tpu.memory_space<vmem>>, %arg4: memref<1x128xf32, #tpu.memory_space<vmem>>, %arg5: memref<128x128xf32, #tpu.memory_space<vmem>>, %arg6: memref<1x128xf32, #tpu.memory_space<vmem>>, %arg7: memref<3x8x32xf32, #tpu.memory_space<vmem>>, %arg8: memref<3x16x32xf32, #tpu.memory_space<vmem>>) attributes {dimension_semantics = [#tpu.dimension_semantics<parallel>], iteration_bounds = array<i64: 2>, scalar_prefetch = 0 : i64, scratch_operands = 0 : i64, tpu.core_type = #tpu.core_type<tc>, window_params = [{transform_indices = @transform_0, window_bounds = array<i64: 3, 8, 32>}, {transform_indices = @transform_1, window_bounds = array<i64: 3, 16, 32>}, {pipeline_mode = #tpu.pipeline_mode<synchronous>, transform_indices = @transform_2, window_bounds = array<i64: 32, 128>}, {pipeline_mode = #tpu.pipeline_mode<synchronous>, transform_indices = @transform_3, window_bounds = array<i64: 1, 128>}, {pipeline_mode = #tpu.pipeline_mode<synchronous>, transform_indices = @transform_4, window_bounds = array<i64: 128, 128>}, {pipeline_mode = #tpu.pipeline_mode<synchronous>, transform_indices = @transform_5, window_bounds = array<i64: 1, 128>}, {transform_indices = @transform_6, window_bounds = array<i64: 3, 8, 32>}, {transform_indices = @transform_7, window_bounds = array<i64: 3, 16, 32>}]} {
    %c0 = arith.constant 0 : index
    %c0_0 = arith.constant 0 : index
    %c0_1 = arith.constant 0 : index
    %0 = vector.load %arg1[%c0, %c0_0, %c0_1] : memref<3x8x32xf32, #tpu.memory_space<vmem>>, vector<3x8x32xf32>
    %c0_2 = arith.constant 0 : index
    %c0_3 = arith.constant 0 : index
    %c0_4 = arith.constant 0 : index
    %1 = vector.load %arg2[%c0_2, %c0_3, %c0_4] : memref<3x16x32xf32, #tpu.memory_space<vmem>>, vector<3x16x32xf32>
    %c0_5 = arith.constant 0 : index
    %c0_6 = arith.constant 0 : index
    %2 = vector.load %arg3[%c0_5, %c0_6] : memref<32x128xf32, #tpu.memory_space<vmem>>, vector<32x128xf32>
    %c0_7 = arith.constant 0 : index
    %c0_8 = arith.constant 0 : index
    %3 = vector.load %arg4[%c0_7, %c0_8] : memref<1x128xf32, #tpu.memory_space<vmem>>, vector<1x128xf32>
    %c0_9 = arith.constant 0 : index
    %c0_10 = arith.constant 0 : index
    %4 = vector.load %arg5[%c0_9, %c0_10] : memref<128x128xf32, #tpu.memory_space<vmem>>, vector<128x128xf32>
    %c0_11 = arith.constant 0 : index
    %c0_12 = arith.constant 0 : index
    %5 = vector.load %arg6[%c0_11, %c0_12] : memref<1x128xf32, #tpu.memory_space<vmem>>, vector<1x128xf32>
    %6 = vector.shape_cast %0 : vector<3x8x32xf32> to vector<24x32xf32>
    %cst = arith.constant dense<0.000000e+00> : vector<24x128xf32>
    %7 = tpu.matmul %6, %2, %cst {dimension_numbers = #tpu.dot_dimension_numbers<[1], [0], [0], [1], [0, 0, 1, 1], [], []>} : vector<24x32xf32>, vector<32x128xf32>, vector<24x128xf32> -> vector<24x128xf32>
    %8 = vector.broadcast %3 : vector<1x128xf32> to vector<24x128xf32>
    %9 = arith.addf %7, %8 : vector<24x128xf32>
    %cst_13 = arith.constant 0.000000e+00 : f32
    %10 = vector.broadcast %cst_13 : f32 to vector<24x128xf32>
    %11 = arith.maximumf %9, %10 : vector<24x128xf32>
    %cst_14 = arith.constant dense<0.000000e+00> : vector<24x128xf32>
    %12 = tpu.matmul %11, %4, %cst_14 {dimension_numbers = #tpu.dot_dimension_numbers<[1], [0], [0], [1], [0, 0, 1, 1], [], []>} : vector<24x128xf32>, vector<128x128xf32>, vector<24x128xf32> -> vector<24x128xf32>
    %13 = vector.broadcast %5 : vector<1x128xf32> to vector<24x128xf32>
    %14 = arith.addf %12, %13 : vector<24x128xf32>
    %cst_15 = arith.constant 0.000000e+00 : f32
    %15 = vector.broadcast %cst_15 : f32 to vector<24x128xf32>
    %16 = arith.maximumf %14, %15 : vector<24x128xf32>
    %17 = vector.shape_cast %16 : vector<24x128xf32> to vector<3x8x128xf32>
    %18 = vector.shape_cast %1 : vector<3x16x32xf32> to vector<48x32xf32>
    %cst_16 = arith.constant dense<0.000000e+00> : vector<48x128xf32>
    %19 = tpu.matmul %18, %2, %cst_16 {dimension_numbers = #tpu.dot_dimension_numbers<[1], [0], [0], [1], [0, 0, 1, 1], [], []>} : vector<48x32xf32>, vector<32x128xf32>, vector<48x128xf32> -> vector<48x128xf32>
    %20 = vector.broadcast %3 : vector<1x128xf32> to vector<48x128xf32>
    %21 = arith.addf %19, %20 : vector<48x128xf32>
    %cst_17 = arith.constant 0.000000e+00 : f32
    %22 = vector.broadcast %cst_17 : f32 to vector<48x128xf32>
    %23 = arith.maximumf %21, %22 : vector<48x128xf32>
    %cst_18 = arith.constant dense<0.000000e+00> : vector<48x128xf32>
    %24 = tpu.matmul %23, %4, %cst_18 {dimension_numbers = #tpu.dot_dimension_numbers<[1], [0], [0], [1], [0, 0, 1, 1], [], []>} : vector<48x128xf32>, vector<128x128xf32>, vector<48x128xf32> -> vector<48x128xf32>
    %25 = vector.broadcast %5 : vector<1x128xf32> to vector<48x128xf32>
    %26 = arith.addf %24, %25 : vector<48x128xf32>
    %cst_19 = arith.constant 0.000000e+00 : f32
    %27 = vector.broadcast %cst_19 : f32 to vector<48x128xf32>
    %28 = arith.maximumf %26, %27 : vector<48x128xf32>
    %29 = vector.shape_cast %28 : vector<48x128xf32> to vector<3x16x128xf32>
    %30 = vector.extract_strided_slice %17 {offsets = [0, 0, 0], sizes = [1, 8, 128], strides = [1, 1, 1]} : vector<3x8x128xf32> to vector<1x8x128xf32>
    %31 = vector.shape_cast %30 : vector<1x8x128xf32> to vector<8x128xf32>
    %32 = vector.extract_strided_slice %29 {offsets = [0, 0, 0], sizes = [1, 16, 128], strides = [1, 1, 1]} : vector<3x16x128xf32> to vector<1x16x128xf32>
    %33 = vector.shape_cast %32 : vector<1x16x128xf32> to vector<16x128xf32>
    %cst_20 = arith.constant dense<0.000000e+00> : vector<8x16xf32>
    %34 = tpu.matmul %31, %33, %cst_20 {dimension_numbers = #tpu.dot_dimension_numbers<[1], [1], [0], [0], [0, 0, 1, 0], [], []>} : vector<8x128xf32>, vector<16x128xf32>, vector<8x16xf32> -> vector<8x16xf32>
    %35 = tpu.transpose %34, [1, 0] : vector<8x16xf32> -> vector<16x8xf32>
    %cst_21 = arith.constant dense<0xFF800000> : vector<8xf32>
    %36 = vector.multi_reduction <maximumf>, %34, %cst_21 [1] : vector<8x16xf32> to vector<8xf32>
    %37 = vector.shape_cast %36 : vector<8xf32> to vector<8x1xf32>
    %38 = vector.broadcast %37 : vector<8x1xf32> to vector<8x16xf32>
    %39 = arith.subf %34, %38 : vector<8x16xf32>
    %40 = math.exp %39 : vector<8x16xf32>
    %cst_22 = arith.constant dense<0.000000e+00> : vector<8xf32>
    %41 = vector.multi_reduction <add>, %40, %cst_22 [1] : vector<8x16xf32> to vector<8xf32>
    %42 = vector.shape_cast %41 : vector<8xf32> to vector<8x1xf32>
    %43 = tpu.reciprocal %42 {approx = true} : vector<8x1xf32> -> vector<8x1xf32>
    %44 = vector.extract_strided_slice %1 {offsets = [0, 0, 0], sizes = [1, 16, 32], strides = [1, 1, 1]} : vector<3x16x32xf32> to vector<1x16x32xf32>
    %45 = vector.shape_cast %44 : vector<1x16x32xf32> to vector<16x32xf32>
    %cst_23 = arith.constant dense<0.000000e+00> : vector<8x32xf32>
    %46 = tpu.matmul %40, %45, %cst_23 {dimension_numbers = #tpu.dot_dimension_numbers<[1], [0], [0], [1], [0, 0, 1, 1], [], []>} : vector<8x16xf32>, vector<16x32xf32>, vector<8x32xf32> -> vector<8x32xf32>
    %47 = vector.broadcast %43 : vector<8x1xf32> to vector<8x32xf32>
    %48 = arith.mulf %46, %47 : vector<8x32xf32>
    %c0_24 = arith.constant 0 : index
    %c0_25 = arith.constant 0 : index
    %c0_26 = arith.constant 0 : index
    %49 = vector.load %arg7[%c0_24, %c0_25, %c0_26] : memref<3x8x32xf32, #tpu.memory_space<vmem>>, vector<1x8x32xf32>
    %50 = vector.shape_cast %49 : vector<1x8x32xf32> to vector<8x32xf32>
    %51 = vector.shape_cast %48 : vector<8x32xf32> to vector<1x8x32xf32>
    tpu.vector_store %arg7[%c0_24, %c0_25, %c0_26], %51 {strides = array<i32>} : memref<3x8x32xf32, #tpu.memory_space<vmem>>, vector<1x8x32xf32>,
    %cst_27 = arith.constant dense<0xFF800000> : vector<16xf32>
    %52 = vector.multi_reduction <maximumf>, %35, %cst_27 [1] : vector<16x8xf32> to vector<16xf32>
    %53 = vector.shape_cast %52 : vector<16xf32> to vector<16x1xf32>
    %54 = vector.broadcast %53 : vector<16x1xf32> to vector<16x8xf32>
    %55 = arith.subf %35, %54 : vector<16x8xf32>
    %56 = math.exp %55 : vector<16x8xf32>
    %cst_28 = arith.constant dense<0.000000e+00> : vector<16xf32>
    %57 = vector.multi_reduction <add>, %56, %cst_28 [1] : vector<16x8xf32> to vector<16xf32>
    %58 = vector.shape_cast %57 : vector<16xf32> to vector<16x1xf32>
    %59 = tpu.reciprocal %58 {approx = true} : vector<16x1xf32> -> vector<16x1xf32>
    %60 = vector.extract_strided_slice %0 {offsets = [0, 0, 0], sizes = [1, 8, 32], strides = [1, 1, 1]} : vector<3x8x32xf32> to vector<1x8x32xf32>
    %61 = vector.shape_cast %60 : vector<1x8x32xf32> to vector<8x32xf32>
    %cst_29 = arith.constant dense<0.000000e+00> : vector<16x32xf32>
    %62 = tpu.matmul %56, %61, %cst_29 {dimension_numbers = #tpu.dot_dimension_numbers<[1], [0], [0], [1], [0, 0, 1, 1], [], []>} : vector<16x8xf32>, vector<8x32xf32>, vector<16x32xf32> -> vector<16x32xf32>
    %63 = vector.broadcast %59 : vector<16x1xf32> to vector<16x32xf32>
    %64 = arith.mulf %62, %63 : vector<16x32xf32>
    %c0_30 = arith.constant 0 : index
    %c0_31 = arith.constant 0 : index
    %c0_32 = arith.constant 0 : index
    %65 = vector.load %arg8[%c0_30, %c0_31, %c0_32] : memref<3x16x32xf32, #tpu.memory_space<vmem>>, vector<1x16x32xf32>
    %66 = vector.shape_cast %65 : vector<1x16x32xf32> to vector<16x32xf32>
    %67 = vector.shape_cast %64 : vector<16x32xf32> to vector<1x16x32xf32>
    tpu.vector_store %arg8[%c0_30, %c0_31, %c0_32], %67 {strides = array<i32>} : memref<3x16x32xf32, #tpu.memory_space<vmem>>, vector<1x16x32xf32>,
    %68 = vector.extract_strided_slice %17 {offsets = [1, 0, 0], sizes = [1, 8, 128], strides = [1, 1, 1]} : vector<3x8x128xf32> to vector<1x8x128xf32>
    %69 = vector.shape_cast %68 : vector<1x8x128xf32> to vector<8x128xf32>
    %70 = vector.extract_strided_slice %29 {offsets = [1, 0, 0], sizes = [1, 16, 128], strides = [1, 1, 1]} : vector<3x16x128xf32> to vector<1x16x128xf32>
    %71 = vector.shape_cast %70 : vector<1x16x128xf32> to vector<16x128xf32>
    %cst_33 = arith.constant dense<0.000000e+00> : vector<8x16xf32>
    %72 = tpu.matmul %69, %71, %cst_33 {dimension_numbers = #tpu.dot_dimension_numbers<[1], [1], [0], [0], [0, 0, 1, 0], [], []>} : vector<8x128xf32>, vector<16x128xf32>, vector<8x16xf32> -> vector<8x16xf32>
    %73 = tpu.transpose %72, [1, 0] : vector<8x16xf32> -> vector<16x8xf32>
    %cst_34 = arith.constant dense<0xFF800000> : vector<8xf32>
    %74 = vector.multi_reduction <maximumf>, %72, %cst_34 [1] : vector<8x16xf32> to vector<8xf32>
    %75 = vector.shape_cast %74 : vector<8xf32> to vector<8x1xf32>
    %76 = vector.broadcast %75 : vector<8x1xf32> to vector<8x16xf32>
    %77 = arith.subf %72, %76 : vector<8x16xf32>
    %78 = math.exp %77 : vector<8x16xf32>
    %cst_35 = arith.constant dense<0.000000e+00> : vector<8xf32>
    %79 = vector.multi_reduction <add>, %78, %cst_35 [1] : vector<8x16xf32> to vector<8xf32>
    %80 = vector.shape_cast %79 : vector<8xf32> to vector<8x1xf32>
    %81 = tpu.reciprocal %80 {approx = true} : vector<8x1xf32> -> vector<8x1xf32>
    %82 = vector.extract_strided_slice %1 {offsets = [1, 0, 0], sizes = [1, 16, 32], strides = [1, 1, 1]} : vector<3x16x32xf32> to vector<1x16x32xf32>
    %83 = vector.shape_cast %82 : vector<1x16x32xf32> to vector<16x32xf32>
    %cst_36 = arith.constant dense<0.000000e+00> : vector<8x32xf32>
    %84 = tpu.matmul %78, %83, %cst_36 {dimension_numbers = #tpu.dot_dimension_numbers<[1], [0], [0], [1], [0, 0, 1, 1], [], []>} : vector<8x16xf32>, vector<16x32xf32>, vector<8x32xf32> -> vector<8x32xf32>
    %85 = vector.broadcast %81 : vector<8x1xf32> to vector<8x32xf32>
    %86 = arith.mulf %84, %85 : vector<8x32xf32>
    %c1 = arith.constant 1 : index
    %c0_37 = arith.constant 0 : index
    %c0_38 = arith.constant 0 : index
    %87 = vector.load %arg7[%c1, %c0_37, %c0_38] : memref<3x8x32xf32, #tpu.memory_space<vmem>>, vector<1x8x32xf32>
    %88 = vector.shape_cast %87 : vector<1x8x32xf32> to vector<8x32xf32>
    %89 = vector.shape_cast %86 : vector<8x32xf32> to vector<1x8x32xf32>
    tpu.vector_store %arg7[%c1, %c0_37, %c0_38], %89 {strides = array<i32>} : memref<3x8x32xf32, #tpu.memory_space<vmem>>, vector<1x8x32xf32>,
    %cst_39 = arith.constant dense<0xFF800000> : vector<16xf32>
    %90 = vector.multi_reduction <maximumf>, %73, %cst_39 [1] : vector<16x8xf32> to vector<16xf32>
    %91 = vector.shape_cast %90 : vector<16xf32> to vector<16x1xf32>
    %92 = vector.broadcast %91 : vector<16x1xf32> to vector<16x8xf32>
    %93 = arith.subf %73, %92 : vector<16x8xf32>
    %94 = math.exp %93 : vector<16x8xf32>
    %cst_40 = arith.constant dense<0.000000e+00> : vector<16xf32>
    %95 = vector.multi_reduction <add>, %94, %cst_40 [1] : vector<16x8xf32> to vector<16xf32>
    %96 = vector.shape_cast %95 : vector<16xf32> to vector<16x1xf32>
    %97 = tpu.reciprocal %96 {approx = true} : vector<16x1xf32> -> vector<16x1xf32>
    %98 = vector.extract_strided_slice %0 {offsets = [1, 0, 0], sizes = [1, 8, 32], strides = [1, 1, 1]} : vector<3x8x32xf32> to vector<1x8x32xf32>
    %99 = vector.shape_cast %98 : vector<1x8x32xf32> to vector<8x32xf32>
    %cst_41 = arith.constant dense<0.000000e+00> : vector<16x32xf32>
    %100 = tpu.matmul %94, %99, %cst_41 {dimension_numbers = #tpu.dot_dimension_numbers<[1], [0], [0], [1], [0, 0, 1, 1], [], []>} : vector<16x8xf32>, vector<8x32xf32>, vector<16x32xf32> -> vector<16x32xf32>
    %101 = vector.broadcast %97 : vector<16x1xf32> to vector<16x32xf32>
    %102 = arith.mulf %100, %101 : vector<16x32xf32>
    %c1_42 = arith.constant 1 : index
    %c0_43 = arith.constant 0 : index
    %c0_44 = arith.constant 0 : index
    %103 = vector.load %arg8[%c1_42, %c0_43, %c0_44] : memref<3x16x32xf32, #tpu.memory_space<vmem>>, vector<1x16x32xf32>
    %104 = vector.shape_cast %103 : vector<1x16x32xf32> to vector<16x32xf32>
    %105 = vector.shape_cast %102 : vector<16x32xf32> to vector<1x16x32xf32>
    tpu.vector_store %arg8[%c1_42, %c0_43, %c0_44], %105 {strides = array<i32>} : memref<3x16x32xf32, #tpu.memory_space<vmem>>, vector<1x16x32xf32>,
    %106 = vector.extract_strided_slice %17 {offsets = [2, 0, 0], sizes = [1, 8, 128], strides = [1, 1, 1]} : vector<3x8x128xf32> to vector<1x8x128xf32>
    %107 = vector.shape_cast %106 : vector<1x8x128xf32> to vector<8x128xf32>
    %108 = vector.extract_strided_slice %29 {offsets = [2, 0, 0], sizes = [1, 16, 128], strides = [1, 1, 1]} : vector<3x16x128xf32> to vector<1x16x128xf32>
    %109 = vector.shape_cast %108 : vector<1x16x128xf32> to vector<16x128xf32>
    %cst_45 = arith.constant dense<0.000000e+00> : vector<8x16xf32>
    %110 = tpu.matmul %107, %109, %cst_45 {dimension_numbers = #tpu.dot_dimension_numbers<[1], [1], [0], [0], [0, 0, 1, 0], [], []>} : vector<8x128xf32>, vector<16x128xf32>, vector<8x16xf32> -> vector<8x16xf32>
    %111 = tpu.transpose %110, [1, 0] : vector<8x16xf32> -> vector<16x8xf32>
    %cst_46 = arith.constant dense<0xFF800000> : vector<8xf32>
    %112 = vector.multi_reduction <maximumf>, %110, %cst_46 [1] : vector<8x16xf32> to vector<8xf32>
    %113 = vector.shape_cast %112 : vector<8xf32> to vector<8x1xf32>
    %114 = vector.broadcast %113 : vector<8x1xf32> to vector<8x16xf32>
    %115 = arith.subf %110, %114 : vector<8x16xf32>
    %116 = math.exp %115 : vector<8x16xf32>
    %cst_47 = arith.constant dense<0.000000e+00> : vector<8xf32>
    %117 = vector.multi_reduction <add>, %116, %cst_47 [1] : vector<8x16xf32> to vector<8xf32>
    %118 = vector.shape_cast %117 : vector<8xf32> to vector<8x1xf32>
    %119 = tpu.reciprocal %118 {approx = true} : vector<8x1xf32> -> vector<8x1xf32>
    %120 = vector.extract_strided_slice %1 {offsets = [2, 0, 0], sizes = [1, 16, 32], strides = [1, 1, 1]} : vector<3x16x32xf32> to vector<1x16x32xf32>
    %121 = vector.shape_cast %120 : vector<1x16x32xf32> to vector<16x32xf32>
    %cst_48 = arith.constant dense<0.000000e+00> : vector<8x32xf32>
    %122 = tpu.matmul %116, %121, %cst_48 {dimension_numbers = #tpu.dot_dimension_numbers<[1], [0], [0], [1], [0, 0, 1, 1], [], []>} : vector<8x16xf32>, vector<16x32xf32>, vector<8x32xf32> -> vector<8x32xf32>
    %123 = vector.broadcast %119 : vector<8x1xf32> to vector<8x32xf32>
    %124 = arith.mulf %122, %123 : vector<8x32xf32>
    %c2 = arith.constant 2 : index
    %c0_49 = arith.constant 0 : index
    %c0_50 = arith.constant 0 : index
    %125 = vector.load %arg7[%c2, %c0_49, %c0_50] : memref<3x8x32xf32, #tpu.memory_space<vmem>>, vector<1x8x32xf32>
    %126 = vector.shape_cast %125 : vector<1x8x32xf32> to vector<8x32xf32>
    %127 = vector.shape_cast %124 : vector<8x32xf32> to vector<1x8x32xf32>
    tpu.vector_store %arg7[%c2, %c0_49, %c0_50], %127 {strides = array<i32>} : memref<3x8x32xf32, #tpu.memory_space<vmem>>, vector<1x8x32xf32>,
    %cst_51 = arith.constant dense<0xFF800000> : vector<16xf32>
    %128 = vector.multi_reduction <maximumf>, %111, %cst_51 [1] : vector<16x8xf32> to vector<16xf32>
    %129 = vector.shape_cast %128 : vector<16xf32> to vector<16x1xf32>
    %130 = vector.broadcast %129 : vector<16x1xf32> to vector<16x8xf32>
    %131 = arith.subf %111, %130 : vector<16x8xf32>
    %132 = math.exp %131 : vector<16x8xf32>
    %cst_52 = arith.constant dense<0.000000e+00> : vector<16xf32>
    %133 = vector.multi_reduction <add>, %132, %cst_52 [1] : vector<16x8xf32> to vector<16xf32>
    %134 = vector.shape_cast %133 : vector<16xf32> to vector<16x1xf32>
    %135 = tpu.reciprocal %134 {approx = true} : vector<16x1xf32> -> vector<16x1xf32>
    %136 = vector.extract_strided_slice %0 {offsets = [2, 0, 0], sizes = [1, 8, 32], strides = [1, 1, 1]} : vector<3x8x32xf32> to vector<1x8x32xf32>
    %137 = vector.shape_cast %136 : vector<1x8x32xf32> to vector<8x32xf32>
    %cst_53 = arith.constant dense<0.000000e+00> : vector<16x32xf32>
    %138 = tpu.matmul %132, %137, %cst_53 {dimension_numbers = #tpu.dot_dimension_numbers<[1], [0], [0], [1], [0, 0, 1, 1], [], []>} : vector<16x8xf32>, vector<8x32xf32>, vector<16x32xf32> -> vector<16x32xf32>
    %139 = vector.broadcast %135 : vector<16x1xf32> to vector<16x32xf32>
    %140 = arith.mulf %138, %139 : vector<16x32xf32>
    %c2_54 = arith.constant 2 : index
    %c0_55 = arith.constant 0 : index
    %c0_56 = arith.constant 0 : index
    %141 = vector.load %arg8[%c2_54, %c0_55, %c0_56] : memref<3x16x32xf32, #tpu.memory_space<vmem>>, vector<1x16x32xf32>
    %142 = vector.shape_cast %141 : vector<1x16x32xf32> to vector<16x32xf32>
    %143 = vector.shape_cast %140 : vector<16x32xf32> to vector<1x16x32xf32>
    tpu.vector_store %arg8[%c2_54, %c0_55, %c0_56], %143 {strides = array<i32>} : memref<3x16x32xf32, #tpu.memory_space<vmem>>, vector<1x16x32xf32>,
    return
  }
  func.func @transform_0(%arg0: i32) -> (i32, i32, i32) {
    %c0_i32 = arith.constant 0 : i32
    %c0_i32_0 = arith.constant 0 : i32
    %c0_i32_1 = arith.constant 0 : i32
    return %arg0, %c0_i32, %c0_i32_0 : i32, i32, i32
  }
  func.func @transform_1(%arg0: i32) -> (i32, i32, i32) {
    %c0_i32 = arith.constant 0 : i32
    %c0_i32_0 = arith.constant 0 : i32
    %c0_i32_1 = arith.constant 0 : i32
    return %arg0, %c0_i32, %c0_i32_0 : i32, i32, i32
  }
  func.func @transform_2(%arg0: i32) -> (i32, i32) {
    %c0_i32 = arith.constant 0 : i32
    %c0_i32_0 = arith.constant 0 : i32
    %c0_i32_1 = arith.constant 0 : i32
    return %c0_i32, %c0_i32_0 : i32, i32
  }
  func.func @transform_3(%arg0: i32) -> (i32, i32) {
    %c0_i32 = arith.constant 0 : i32
    %c0_i32_0 = arith.constant 0 : i32
    %c0_i32_1 = arith.constant 0 : i32
    return %c0_i32, %c0_i32_0 : i32, i32
  }
  func.func @transform_4(%arg0: i32) -> (i32, i32) {
    %c0_i32 = arith.constant 0 : i32
    %c0_i32_0 = arith.constant 0 : i32
    %c0_i32_1 = arith.constant 0 : i32
    return %c0_i32, %c0_i32_0 : i32, i32
  }
  func.func @transform_5(%arg0: i32) -> (i32, i32) {
    %c0_i32 = arith.constant 0 : i32
    %c0_i32_0 = arith.constant 0 : i32
    %c0_i32_1 = arith.constant 0 : i32
    return %c0_i32, %c0_i32_0 : i32, i32
  }
  func.func @transform_6(%arg0: i32) -> (i32, i32, i32) {
    %c0_i32 = arith.constant 0 : i32
    %c0_i32_0 = arith.constant 0 : i32
    %c0_i32_1 = arith.constant 0 : i32
    return %arg0, %c0_i32, %c0_i32_0 : i32, i32, i32
  }
  func.func @transform_7(%arg0: i32) -> (i32, i32, i32) {
    %c0_i32 = arith.constant 0 : i32
    %c0_i32_0 = arith.constant 0 : i32
    %c0_i32_1 = arith.constant 0 : i32
    return %arg0, %c0_i32, %c0_i32_0 : i32, i32, i32
  }
}

</mosaic_0001>

<bundles_post_ra>
// kernel: tpu_custom_call.1
= control target key start
LH: loop header
LB: loop body
LE: loop exit
PB: predicated region body
PF: predicated region fallthrough
CT: control target
= control target key end

     0   :  { %s1988_s0 = inlined_call_operand.hbm [shape: f32[6,8,32], index: 0, kind: input, shape index: {}]   ;;  %s1989_s1 = inlined_call_operand.hbm [shape: f32[6,16,32], index: 1, kind: input, shape index: {}]   ;;  %s1990_s2 = inlined_call_operand.hbm [shape: f32[32,128], index: 2, kind: input, shape index: {}]   ;;  %s1991_s3 = inlined_call_operand.vmem [shape: f32[1,128], index: 3, kind: input, shape index: {}]   ;;  %s1992_s4 = inlined_call_operand.hbm [shape: f32[128,128], index: 4, kind: input, shape index: {}]   ;;  %s1993_s5 = inlined_call_operand.vmem [shape: f32[1,128], index: 5, kind: input, shape index: {}]   ;;  %s1994_s6 = inlined_call_operand.hbm [shape: f32[6,8,32], index: 6, kind: output, shape index: {0}]   ;;  %s1995_s7 = inlined_call_operand.hbm [shape: f32[6,16,32], index: 7, kind: output, shape index: {1}]  }
   0x1   :  { %2004 = sst [smem:[#allocation23_spill]] %s1988_s0 }
   0x2   :  { %2005 = sst [smem:[#allocation24_spill]] %s1990_s2 }
   0x3   :  { %2006 = sst [smem:[#allocation25_spill]] %s1992_s4 }
   0x4   :  { %13 = vsyncpa [#allocation3], 0 }
   0x5   :  { %15 = vsyncpa [#allocation3 + $0x1], 0 }
   0x6   :  { %16 = vsyncpa [#allocation6], 0 }
   0x7   :  { %18 = vsyncpa [#allocation6 + $0x1], 0 }
   0x8   :  { %19 = vsyncpa [#allocation9], 0 }
   0x9   :  { %20 = vsyncpa [#allocation4], 0 }
   0xa   :  { %22 = vsyncpa [#allocation4 + $0x1], 0 }
   0xb   :  { %23 = vsyncpa [#allocation12], 0 }
   0xc   :  { %25 = vsyncpa [#allocation12 + $0x1], 0  ;;  %s1658_s24 = smov 0   ;;  %s1660_s25 = smov 0  }
   0xd   :  { %s1662_s26 = smov 0   ;;  %s1664_s27 = smov 0  }
   0xe LB: > { %2007 = sst [smem:[#allocation19_spill]] %s1606_s26  ;;  %s1679_s28 = sadd.s32 4294967295, %s1610_s27   ;;  %s1610_s27 = sphi %s1664_s27, %s2024_s27   ;;  %s1606_s26 = sphi %s1662_s26, %s2026_s26   ;;  %s1602_s25 = sphi %s1660_s25, %s2028_s25   ;;  %s1598_s24 = sphi %s1658_s24, %s2027_s24  }
   0xf   : > { %s1208_s29 = sadd.s32 4294967294, %s1610_s27   ;;  %p51_p0 = scmp.ne.s32.totalorder %s1602_s25, %s1598_s24 }
  0x10   : > { %p52_p1 = scmp.eq.s32.totalorder %s1679_s28, 0  ;;  %p185_p2 = scmp.eq.s32.totalorder %s1679_s28, 1 }
  0x11   : > { %p191_p3 = scmp.eq.s32.totalorder %s1208_s29, 1  ;;  %p1209_p5 = scmp.ge.s32.totalorder %s1610_s27, 1 }
  0x12   : > { %p1688_p4 = por %p52_p1, %p51_p0  ;;  %p224_p7 = scmp.lt.s32.totalorder %s1610_s27, 3 }
  0x13   : > { %p1693_p6 = por %p191_p3, %p51_p0  ;;  %s2011_s2 = sld [smem:[#allocation24_spill]] }
  0x14   : > { %p1701_p8 = pnand %p1209_p5, %p224_p7  ;;  %s1612_s13 = smov [#allocation7]  }
  0x15   : > { %s2009_s8 = scalar_select %p1693_p6, 1, 0 }
  0x16   : > { %p1276_p9 = pneg %p1701_p8  ;;  %s237_s14 = sshll.u32 %s1612_s13, 4  ;;  %s238_s14 = int_to_ptr.vmem [resolvable:$true] %s237_s14 }
  0x17   : > { %2010 = sst [smem:[#allocation20_spill]] %s2009_s8  ;;  %s1996_s18 = smov 128  }
  0x18   : > { %p1277_p10 = pnand %p1276_p9, %p52_p1  ;;  %s2013_s4 = sld [smem:[#allocation25_spill]] }
  0x19   : > { %s235_s11 = sshll.u32 %s2011_s2, 4  ;;  %s1998_s19 = smov 8   ;;  %s236_s11 = int_to_ptr.hbm [resolvable:$true] %s235_s11 }
  0x1a   : > { %1279 = dma.hbm_to_vmem [thread:$0]  (!%p1277_p10), %s236_s11, 512, %s238_s14, [#allocation6], %s1996_s18, %s1996_s18, %s1998_s19  }
  0x1b   : > { %s1615_s20 = smov [#allocation8]   ;;  %s1720_s22 = sadd.s32 1, %s1610_s27  }
  0x1c   : > { %s254_s21 = sshll.u32 %s1615_s20, 4  ;;  %2014 = sst [smem:[#allocation21_spill]] %s1720_s22  ;;  %s255_s21 = int_to_ptr.vmem [resolvable:$true] %s254_s21 }
  0x1d   : > { %s38_s23 = sadd.s32 1, %s1606_s26  ;;  %s35_s29 = ssub.s32 %s1610_s27, %s1720_s22 }
  0x1e   : > { %s252_s17 = sshll.u32 %s2013_s4, 4  ;;  %p45_p12 = scmp.ne.s32.totalorder %s1606_s26, %s1602_s25  ;;  %s253_s17 = int_to_ptr.hbm [resolvable:$true] %s252_s17 }
  0x1f   : > { %1282 = dma.hbm_to_vmem [thread:$0]  (!%p1277_p10), %s253_s17, 2048, %s255_s21, [#allocation9], %s1996_s18, %s1996_s18, %s1998_s19  }
  0x20   : > { %p36_p13 = scmp.eq.s32.totalorder %s35_s29, 0  ;;  %p46_p0 = scmp.eq.s32.totalorder %s1610_s27, 0 }
  0x21   : > { %p1730_p3 = por %p185_p2, %p45_p12  ;;  %p1299_p5 = scmp.lt.s32.totalorder %s1610_s27, 2 }
  0x22   : > { %s1736_s10 = scalar_select %p36_p13, %s1606_s26, %s38_s23  }
  0x23   : > { %p47_p7 = por %p46_p0, %p45_p12  ;;  %s1739_s11 = sand.u32 1, %s1606_s26  }
  0x24   : > { %2016 = sst [smem:[#allocation22_spill]] %s1736_s10  ;;  %s1256_s13 = smul.u32 24, %s1739_s11 }
  0x25   : > { %s1248_s14 = smul.u32 24, %s1610_s27  ;;  %p1743_p9 = pnand %p1299_p5, %p47_p7 }
  0x26   : > { %s2018_s0 = sld [smem:[#allocation23_spill]]  ;;  %s275_s23 = scalar_lea.vmem [#allocation2], %s1256_s13 }
  0x27   : > { %s283_s29 = sshll.u32 %s275_s23, 4  ;;  %s272_s19 = scalar_lea.sflag [#allocation3], %s1739_s11  ;;  %s284_s29 = int_to_ptr.vmem [resolvable:$true] %s283_s29 }
  0x28   : > { %p1444_p10 = pneg %p1743_p9 }
  0x2c   : > { %s280_s21 = scalar_lea.hbm %s2018_s0, %s1248_s14  ;;  %s1447_s14 = scalar_lea.hbm %s2018_s0, 48 }
  0x2d   : > { %s281_s18 = sshll.u32 %s280_s21, 4  ;;  %s282_s18 = int_to_ptr.hbm [resolvable:$true] %s281_s18 }
  0x2e   : > { %s1440_s2 = sshra.s32 %s282_s18, 4  ;;  %s1441_s2 = int_to_ptr.hbm [resolvable:$true] %s1440_s2 }
  0x2f   : > { %s1442_s4 = scalar_lea.hbm %s1441_s2, 24  ;;  %p1448_p0 = scmp.lt.s32.totalorder %s1441_s2, %s2018_s0 }
  0x30   : > { %p1443_p2 = scmp.ne.s32.totalorder %s1441_s2, %s1442_s4  ;;  %p1449_p5 = scmp.lt.s32.totalorder %s1447_s14, %s1442_s4 }
  0x32   : > { %p1445_p12 = pnand %p1444_p10, %p1443_p2  ;;  %p1450_p7 = por %p1449_p5, %p1448_p0 }
  0x34   : > { %p1446_p13 = pneg %p1445_p12 }
  0x36   : > { %p1451_p11 = pnand %p1450_p7, %p1446_p13 }
  0x38   : > { %1454 = shalt.err (!%p1451_p11)
}
  0x39   : > { %s2019_s20 = smov 8   ;;  %s2020_s21 = smov 128  }
  0x3a   : > { %1286 = dma.hbm_to_vmem [thread:$0]  (!%p1743_p9), %s282_s18, 384, %s284_s29, %s272_s19, %s2020_s21, %s2020_s21, %s2019_s20  }
  0x3b   : > { %s1257_s10 = smul.u32 48, %s1739_s11  ;;  %s2021_s17 = sand.u32 1, %s1610_s27  }
  0x3c   : > { %s1254_s16 = smul.u32 48, %s1610_s27  ;;  %s294_s0 = scalar_lea.sflag [#allocation6], %s2021_s17 }
  0x3d   : > { %s297_s4 = scalar_lea.vmem [#allocation5], %s1257_s10  ;;  %s1477_s26 = scalar_lea.hbm %s1989_s1, 96 }
  0x3e   : > { %s303_s2 = scalar_lea.hbm %s1989_s1, %s1254_s16  ;;  %s306_s14 = sshll.u32 %s297_s4, 4  ;;  %s307_s14 = int_to_ptr.vmem [resolvable:$true] %s306_s14 }
  0x3f   : > { %s304_s13 = sshll.u32 %s303_s2, 4  ;;  %s305_s13 = int_to_ptr.hbm [resolvable:$true] %s304_s13 }
  0x40   : > { %s1470_s22 = sshra.s32 %s305_s13, 4  ;;  %s1471_s22 = int_to_ptr.hbm [resolvable:$true] %s1470_s22 }
  0x41   : > { %s1472_s8 = scalar_lea.hbm %s1471_s22, 48  ;;  %p1478_p13 = scmp.lt.s32.totalorder %s1471_s22, %s1989_s1 }
  0x42   : > { %p1473_p11 = scmp.ne.s32.totalorder %s1471_s22, %s1472_s8  ;;  %p1479_p0 = scmp.lt.s32.totalorder %s1477_s26, %s1472_s8 }
  0x44   : > { %p1475_p2 = pnand %p1473_p11, %p1444_p10  ;;  %p1480_p5 = por %p1479_p0, %p1478_p13 }
  0x46   : > { %p1476_p12 = pneg %p1475_p2 }
  0x48   : > { %p1481_p7 = pnand %p1480_p5, %p1476_p12 }
  0x4a   : > { %1484 = shalt.err (!%p1481_p7)
}
  0x4b   : > { %1289 = dma.hbm_to_vmem [thread:$0]  (!%p1743_p9), %s305_s13, 768, %s307_s14, %s294_s0, %s2020_s21, %s2020_s21, %s2019_s20  }
  0x4c   : > { %318 = sbr.rel (%p1701_p8) target bundleno = 997 (0x3e5), region = 44  ;;  %s1792_s10 = sand.u32 (!%p1701_p8), 1, %s1602_s25  }
  0x4d   : > { %s1258_s8 = smul.u32 (!%p1701_p8), 24, %s1792_s10  ;;  %s321_s22 = scalar_lea.sflag (!%p1701_p8), [#allocation3], %s1792_s10 }
  0x4f   : > { %s1798_s16 = scalar_lea.vmem (!%p1701_p8), [#allocation2], %s1258_s8 }
  0x51   : > { %1573 = dma.done.wait (%p1688_p4), %s321_s22, 384  }
  0x52   : > { %1575 = vsyncadd (%p1688_p4), %s321_s22, 4294966912  ;;  %s330_s0 = sand.u32 1, %s1679_s28   ;;  %s1259_s12 = smul.u32 48, %s1792_s10 }
  0x53   : > { %s331_s15 = scalar_lea.sflag [#allocation6], %s330_s0 }
  0x54   : > { %s1808_s20 = scalar_lea.vmem [#allocation5], %s1259_s12 }
  0x55   : > { %1577 = dma.done.wait (%p1688_p4), %s331_s15, 768  }
  0x56   : > { %1579 = vsyncadd (%p1688_p4), %s331_s15, 4294966528 }
  0x57   : > { %1581 = dma.done.wait (%p52_p1), [#allocation6], 512  }
  0x58   : > { %1583 = vsyncadd (%p52_p1), [#allocation6], 4294966784 }
  0x59   : > { %1585 = dma.done.wait (%p52_p1), [#allocation9], 2048  }
  0x5a   : > { %1587 = vsyncadd (%p52_p1), [#allocation9], 4294965248  ;;  %v402_v0 = vld [vmem:[#allocation7 + $0x18] sm:$0xff]  ;;  %v401_v1 = vld [vmem:[#allocation7 + $0x10] sm:$0xff]  ;;  %vm424_vm0 = vcmask 261120   ;;  %vm647_vm1 = vcmask 130048  }
  0x5b   : > { %525 = vmatpush.msra.mxu2 %v402_v0  ;;  %446 = vmatpush.msra.mxu0 %v402_v0  ;;  %v400_v2 = vld [vmem:[#allocation7 + $0x8] sm:$0xff]  ;;  %v399_v3 = vld [vmem:[#allocation7] sm:$0xff]  ;;  %v1836_v7 = vld [vmem:[%s1798_s16 + $0x8] sm:$0xff]  ;;  %vm683_vm2 = vcmask 64512   ;;  %s378_s4 = scalar_lea.vmem [#allocation10], %s1258_s8  ;;  %s1251_s14 = smul.u32 24, %s1679_s28 }
  0x5c   : > { %v1823_v4 = vld [vmem:[%s1808_s20] sm:$0xff]  ;;  %v1826_v5 = vld [vmem:[%s1798_s16] sm:$0xff]  ;;  %v1833_v6 = vld [vmem:[%s1808_s20 + $0x8] sm:$0xff]  ;;  %s1039_s19 = sshll.u32 %s378_s4, 4  ;;  %s1921_s11 = scalar_lea.vmem [#allocation11], %s1259_s12  ;;  %s1917_s19 = int_to_ptr.vmem [resolvable:$true] %s1039_s19 }
  0x5d   : > { %526 = vmatpush.msra.mxu2 %v401_v1  ;;  %447 = vmatpush.msra.mxu0 %v401_v1  ;;  %v419_v8 = vld [vmem:[#allocation8 + $0x78] sm:$0xff]  ;;  %v418_v9 = vld [vmem:[#allocation8 + $0x70] sm:$0xff]  ;;  %v417_v10 = vld [vmem:[#allocation8 + $0x68] sm:$0xff]  ;;  %s1038_s18 = scalar_lea.hbm %s1994_s6, %s1251_s14  ;;  %s1022_s29 = scalar_lea.sflag [#allocation4], %s1792_s10 }
  0x5e   : > { %554 = vmatpush.msra.mxu3 %v419_v8  ;;  %466 = vmatpush.msra.mxu1 %v419_v8  ;;  %v416_v11 = vld [vmem:[#allocation8 + $0x60] sm:$0xff]  ;;  %v415_v14 = vld [vmem:[#allocation8 + $0x58] sm:$0xff]  ;;  %v414_v15 = vld [vmem:[#allocation8 + $0x50] sm:$0xff]  ;;  %s1041_s26 = sshll.u32 %s1038_s18, 4  ;;  %s1520_s15 = scalar_lea.hbm %s1994_s6, 48  ;;  %s1042_s26 = int_to_ptr.hbm [resolvable:$true] %s1041_s26 }
  0x5f   : > { %527 = vmatpush.msra.mxu2 %v400_v2  ;;  %448 = vmatpush.msra.mxu0 %v400_v2  ;;  %v1843_v12 = vld [vmem:[%s1808_s20 + $0x10] sm:$0xff]  ;;  %v1846_v13 = vld [vmem:[%s1798_s16 + $0x10] sm:$0xff]  ;;  %v413_v16 = vld [vmem:[#allocation8 + $0x48] sm:$0xff]  ;;  %s1514_s8 = sshra.s32 %s1042_s26, 4  ;;  %s1515_s8 = int_to_ptr.hbm [resolvable:$true] %s1514_s8 }
  0x60   : > { %555 = vmatpush.msra.mxu3 %v418_v9  ;;  %467 = vmatpush.msra.mxu1 %v418_v9  ;;  %v412_v17 = vld [vmem:[#allocation8 + $0x40] sm:$0xff]  ;;  %v1853_v18 = vld [vmem:[%s1808_s20 + $0x18] sm:$0xff]  ;;  %v410_v20 = vld [vmem:[#allocation8 + $0x30] sm:$0xff]  ;;  %s1516_s22 = scalar_lea.hbm %s1515_s8, 24  ;;  %p1521_p9 = scmp.lt.s32.totalorder %s1515_s8, %s1994_s6 }
  0x61   : > { %528 = vmatpush.msra.mxu2 %v399_v3  ;;  %449 = vmatpush.msra.mxu0 %v399_v3  ;;  %v411_v19 = vld [vmem:[#allocation8 + $0x38] sm:$0xff]  ;;  %v409_v21 = vld [vmem:[#allocation8 + $0x28] sm:$0xff]  ;;  %v408_v22 = vld [vmem:[#allocation8 + $0x20] sm:$0xff]  ;;  %p1517_p1 = scmp.ne.s32.totalorder %s1515_s8, %s1516_s22  ;;  %p1522_p10 = scmp.lt.s32.totalorder %s1520_s15, %s1516_s22 }
  0x62   : > { %1222 = vmatmul.msk.f32.vlgmr.msra.gmra.mxu2 %vm424_vm0, %v1823_v4  ;;  %1219 = vmatmul.msk.f32.vlgmr.msra.gmra.mxu0 %vm424_vm0, %v1826_v5  ;;  %v1858_v23 = vld [vmem:[%s1808_s20 + $0x20] sm:$0xff]  ;;  %v407_v24 = vld [vmem:[#allocation8 + $0x18] sm:$0xff]  ;;  %v405_v27 = vld [vmem:[#allocation8 + $0x8] sm:$0xff] }
  0x63   : > { %556 = vmatpush.msra.mxu3 %v417_v10  ;;  %468 = vmatpush.msra.mxu1 %v417_v10  ;;  %v1863_v25 = vld [vmem:[%s1808_s20 + $0x28] sm:$0xff]  ;;  %v406_v26 = vld [vmem:[#allocation8 + $0x10] sm:$0xff]  ;;  %v404_v28 = vld [vmem:[#allocation8] sm:$0xff]  ;;  %p1518_p4 = pnand %p1517_p1, %p1730_p3  ;;  %p1523_p11 = por %p1522_p10, %p1521_p9 }
  0x64   : > { %v1342_v29 = vld [vmem:[%s1991_s3] ss:$0 sm:$0xff] }
  0x65   : > { %557 = vmatpush.msra.mxu3 %v416_v11  ;;  %469 = vmatpush.msra.mxu1 %v416_v11  ;;  %v1343_v58 = vld [vmem:[%s1993_s5] ss:$0 sm:$0xff]  ;;  %p1519_p8 = pneg %p1518_p4 }
  0x67   : > { %558 = vmatpush.msra.mxu3 %v415_v14  ;;  %470 = vmatpush.msra.mxu1 %v415_v14  ;;  %p1524_p2 = pnand %p1523_p11, %p1519_p8 }
  0x69   : > { %559 = vmatpush.msra.mxu3 %v414_v15  ;;  %471 = vmatpush.msra.mxu1 %v414_v15 }
  0x6a   : > { %1223 = vmatmul.msk.f32.gmra.mxu2 %vm424_vm0, %v1833_v6  ;;  %1220 = vmatmul.msk.f32.gmra.mxu0 %vm424_vm0, %v1836_v7 }
  0x6b   : > { %560 = vmatpush.msra.mxu3 %v413_v16  ;;  %472 = vmatpush.msra.mxu1 %v413_v16 }
  0x6d   : > { %561 = vmatpush.msra.mxu3 %v412_v17  ;;  %473 = vmatpush.msra.mxu1 %v412_v17 }
  0x6f   : > { %562 = vmatpush.msra.mxu3 %v411_v19  ;;  %474 = vmatpush.msra.mxu1 %v411_v19 }
  0x71   : > { %563 = vmatpush.msra.mxu3 %v410_v20  ;;  %475 = vmatpush.msra.mxu1 %v410_v20 }
  0x72   : > { %1224 = vmatmul.msk.f32.gmra.mxu2 %vm424_vm0, %v1843_v12  ;;  %1221 = vmatmul.msk.f32.gmra.mxu0 %vm424_vm0, %v1846_v13 }
  0x73   : > { %564 = vmatpush.msra.mxu3 %v409_v21  ;;  %476 = vmatpush.msra.mxu1 %v409_v21 }
  0x75   : > { %565 = vmatpush.msra.mxu3 %v408_v22  ;;  %477 = vmatpush.msra.mxu1 %v408_v22 }
  0x77   : > { %566 = vmatpush.msra.mxu3 %v407_v24  ;;  %478 = vmatpush.msra.mxu1 %v407_v24 }
  0x79   : > { %567 = vmatpush.msra.mxu3 %v406_v26  ;;  %479 = vmatpush.msra.mxu1 %v406_v26 }
  0x7a   : > { %1225 = vmatmul.msk.f32.gmra.mxu2 %vm424_vm0, %v1853_v18 }
  0x7b   : > { %568 = vmatpush.msra.mxu3 %v405_v27  ;;  %480 = vmatpush.msra.mxu1 %v405_v27 }
  0x7d   : > { %569 = vmatpush.msra.mxu3 %v404_v28  ;;  %481 = vmatpush.msra.mxu1 %v404_v28 }
  0x82   : > { %1226 = vmatmul.msk.f32.gmra.mxu2 %vm424_vm0, %v1858_v23 }
  0x8a   : > { %1227 = vmatmul.msk.f32.gmra.mxu2 %vm424_vm0, %v1863_v25 }
  0xdf   : > { %v451_v30 = vpop.f32.mrf.mxu0 }
  0xe0   : > { %v452_v31 = vadd.f32 %v1342_v29, %v451_v30 }
  0xe2   : > { %v460_v32 = vmax.f32 %v452_v31, 0.0 }
  0xe4   : > { %482 = vmatmul.f32.vlgmr.msra.gmra.mxu1 %v460_v32 }
  0xe5   : > { %v530_v33 = vpop.f32.mrf.mxu2 }
  0xe6   : > { %v531_v34 = vadd.f32 %v1342_v29, %v530_v33 }
  0xe7   : > { %v454_v35 = vpop.f32.mrf.mxu0 }
  0xe8   : > { %v548_v36 = vmax.f32 %v531_v34, 0.0  ;;  %v455_v37 = vadd.f32 %v1342_v29, %v454_v35 }
  0xea   : > { %570 = vmatmul.f32.vlgmr.msra.gmra.mxu3 %v548_v36  ;;  %v461_v38 = vmax.f32 %v455_v37, 0.0 }
  0xec   : > { %485 = vmatmul.f32.gmra.mxu1 %v461_v38 }
  0xed   : > { %v533_v39 = vpop.f32.mrf.mxu2 }
  0xee   : > { %v534_v40 = vadd.f32 %v1342_v29, %v533_v39 }
  0xef   : > { %v457_v42 = vpop.f32.mrf.mxu0 }
  0xf0   : > { %v549_v41 = vmax.f32 %v534_v40, 0.0  ;;  %v458_v43 = vadd.f32 %v1342_v29, %v457_v42 }
  0xf2   : > { %573 = vmatmul.f32.gmra.mxu3 %v549_v41  ;;  %v462_v45 = vmax.f32 %v458_v43, 0.0 }
  0xf4   : > { %488 = vmatmul.f32.gmra.mxu1 %v462_v45 }
  0xf5   : > { %v536_v44 = vpop.f32.mrf.mxu2 }
  0xf6   : > { %v537_v46 = vadd.f32 %v1342_v29, %v536_v44 }
  0xf8   : > { %v550_v47 = vmax.f32 %v537_v46, 0.0 }
  0xfa   : > { %576 = vmatmul.f32.gmra.mxu3 %v550_v47 }
  0xfd   : > { %v539_v48 = vpop.f32.mrf.mxu2 }
  0xfe   : > { %v540_v49 = vadd.f32 %v1342_v29, %v539_v48 }
 0x100   : > { %v551_v50 = vmax.f32 %v540_v49, 0.0 }
 0x102   : > { %579 = vmatmul.f32.gmra.mxu3 %v551_v50 }
 0x105   : > { %v542_v51 = vpop.f32.mrf.mxu2 }
 0x106   : > { %v543_v52 = vadd.f32 %v1342_v29, %v542_v51 }
 0x108   : > { %v552_v53 = vmax.f32 %v543_v52, 0.0 }
 0x10a   : > { %582 = vmatmul.f32.gmra.mxu3 %v552_v53 }
 0x10d   : > { %v545_v54 = vpop.f32.mrf.mxu2 }
 0x10e   : > { %v546_v55 = vadd.f32 %v1342_v29, %v545_v54 }
 0x110   : > { %v553_v56 = vmax.f32 %v546_v55, 0.0 }
 0x112   : > { %585 = vmatmul.f32.gmra.mxu3 %v553_v56 }
 0x161   : > { %v483_v61 = vpop.f32.mrf.mxu1 }
 0x162   : > { %v484_v0 = vadd.f32 %v1343_v58, %v483_v61 }
 0x164   : > { %v492_v2 = vmax.f32 %v484_v0, 0.0 }
 0x169   : > { %v486_v11 = vpop.f32.mrf.mxu1 }
 0x16a   : > { %v487_v15 = vadd.f32 %v1343_v58, %v486_v11 }
 0x16c   : > { %v493_v17 = vmax.f32 %v487_v15, 0.0 }
 0x16d   : > { %v571_v57 = vpop.f32.mrf.mxu3 }
 0x16e   : > { %v572_v62 = vadd.f32 %v1343_v58, %v571_v57 }
 0x170   : > { %v589_v1 = vmax.f32 %v572_v62, 0.0 }
 0x171   : > { %v489_v20 = vpop.f32.mrf.mxu1 }
 0x172   : > { %v490_v22 = vadd.f32 %v1343_v58, %v489_v20 }
 0x174   : > { %v494_v26 = vmax.f32 %v490_v22, 0.0 }
 0x175   : > { %v574_v59 = vpop.f32.mrf.mxu3 }
 0x176   : > { %v575_v60 = vadd.f32 %v1343_v58, %v574_v59 }
 0x178   : > { %v590_v63 = vmax.f32 %v575_v60, 0.0 }
 0x17a   : > { %609 = vmatpush.xpose.msrb.mxu0 %v590_v63 }
 0x17d   : > { %v577_v3 = vpop.f32.mrf.mxu3 }
 0x17e   : > { %610 = vmatpush.xpose.msrb.mxu0 %v589_v1  ;;  %v578_v9 = vadd.f32 %v1343_v58, %v577_v3 }
 0x180   : > { %v591_v16 = vmax.f32 %v578_v9, 0.0 }
 0x181   : > { %611 = vmatmul.f32.vlgmr.msrb.gmra.mxu0 %v492_v2 }
 0x182   : > { %675 = vmatpush.msra.mxu0 %v1833_v6 }
 0x184   : > { %676 = vmatpush.msra.mxu0 %v1823_v4 }
 0x185   : > { %v580_v8 = vpop.f32.mrf.mxu3 }
 0x186   : > { %725 = vmatpush.msrb.mxu0 %v1826_v5  ;;  %v581_v10 = vadd.f32 %v1343_v58, %v580_v8 }
 0x188   : > { %v592_v14 = vmax.f32 %v581_v10, 0.0 }
 0x18a   : > { %751 = vmatpush.xpose.msrb.mxu2 %v592_v14 }
 0x18d   : > { %v583_v19 = vpop.f32.mrf.mxu3 }
 0x18e   : > { %752 = vmatpush.xpose.msrb.mxu2 %v591_v16  ;;  %v584_v5 = vadd.f32 %v1343_v58, %v583_v19 }
 0x190   : > { %v593_v24 = vmax.f32 %v584_v5, 0.0 }
 0x191   : > { %753 = vmatmul.f32.vlgmr.msrb.gmra.mxu2 %v493_v17 }
 0x192   : > { %816 = vmatpush.msra.mxu2 %v1853_v18 }
 0x194   : > { %817 = vmatpush.msra.mxu2 %v1843_v12 }
 0x195   : > { %v586_v4 = vpop.f32.mrf.mxu3 }
 0x196   : > { %958 = vmatpush.msrb.mxu2 %v1863_v25  ;;  %v587_v6 = vadd.f32 %v1343_v58, %v586_v4 }
 0x198   : > { %959 = vmatpush.msrb.mxu2 %v1858_v23  ;;  %v594_v21 = vmax.f32 %v587_v6, 0.0 }
 0x19a   : > { %893 = vmatpush.xpose.msrb.mxu1 %v594_v21 }
 0x19e   : > { %894 = vmatpush.xpose.msrb.mxu1 %v593_v24 }
 0x1a1   : > { %895 = vmatmul.f32.vlgmr.msrb.gmra.mxu1 %v494_v26 }
 0x1a2   : > { %1008 = vmatpush.msra.mxu1 %v1846_v13 }
 0x1fe   : > { %v612_v18 = vpop.f32.mrf.mxu0 }
 0x1ff   : > { %615 = vxpose.xlu0.b32.start.end [1/1] (short) (narrow) %v612_v18, 16  ;;  %v648_v27 = vsel %vm647_vm1, %v612_v18, -inf }
 0x214   : > { %v754_v12 = vpop.f32.mrf.mxu2 }
 0x215   : > { %757 = vxpose.xlu1.b32.start.end [1/1] (short) (narrow) %v754_v12, 16  ;;  %v789_v25 = vsel %vm647_vm1, %v754_v12, -inf }
 0x216   : > { %790 = vmax.xlane.f32.xlu2 %v789_v25 }
 0x21e   : > { %v896_v23 = vpop.f32.mrf.mxu1 }
 0x21f   : > { %v931_v35 = vsel %vm647_vm1, %v896_v23, -inf }
 0x225   : > { %899 = vxpose.xlu1.b32.start.end [1/1] (short) (narrow) %v896_v23, 16 }
 0x278   : > { %649 = vmax.xlane.f32.xlu0 %v648_v27 }
 0x289   : > { %v791_v28 = vpop.xlane.xlu2 %790 }
 0x28a   : > { %v792_v29 = vsub.f32 %v754_v12, %v791_v28 }
 0x28c   : > { %v793_v30 = vmul.f32 1.442695, %v792_v29 }
 0x28e   : > { %1344 = vpow2.f32 %v793_v30 }
 0x294   : > { %v1345_v31 = vpop.eup %1344 }
 0x295   : > { %1231 = vmatmul.msk.f32.vlgmr.msra.gmra.mxu2 %vm647_vm1, %v1345_v31  ;;  %v795_v49 = vsel %vm647_vm1, %v1345_v31, 0.0 }
 0x2a3   : > { %v631_v13 = vpop.trf.xlu0 }
 0x2a4   : > { %v684_v32 = vsel %vm683_vm2, %v631_v13, -inf }
 0x2a5   : > { %685 = vmax.xlane.f32.xlu2 %v684_v32 }
 0x2ab   : > { %v632_v33 = vpop.trf.xlu0 }
 0x2ac   : > { %v687_v34 = vsel %vm683_vm2, %v632_v33, -inf }
 0x2ad   : > { %688 = vmax.xlane.f32.xlu2 %v687_v34 }
 0x2b5   : > { %932 = vmax.xlane.f32.xlu2 %v931_v35 }
 0x2b9   : > { %v773_v36 = vpop.trf.xlu1 }
 0x2ba   : > { %v825_v37 = vsel %vm683_vm2, %v773_v36, -inf }
 0x2bb   : > { %826 = vmax.xlane.f32.xlu1 %v825_v37 }
 0x2c1   : > { %v774_v38 = vpop.trf.xlu1 }
 0x2c2   : > { %v828_v39 = vsel %vm683_vm2, %v774_v38, -inf }
 0x2c3   : > { %829 = vmax.xlane.f32.xlu2 %v828_v39 }
 0x2c9   : > { %v915_v40 = vpop.trf.xlu1 }
 0x2ca   : > { %v967_v41 = vsel %vm683_vm2, %v915_v40, -inf }
 0x2cb   : > { %968 = vmax.xlane.f32.xlu2 %v967_v41 }
 0x2d1   : > { %v916_v42 = vpop.trf.xlu1 }
 0x2d2   : > { %v970_v43 = vsel %vm683_vm2, %v916_v42, -inf }
 0x2d3   : > { %971 = vmax.xlane.f32.xlu2 %v970_v43 }
 0x2eb   : > { %v650_v44 = vpop.xlane.xlu0 %649 }
 0x2ec   : > { %v651_v45 = vsub.f32 %v612_v18, %v650_v44 }
 0x2ee   : > { %v652_v46 = vmul.f32 1.442695, %v651_v45 }
 0x2f0   : > { %1346 = vpow2.f32 %v652_v46 }
 0x2f6   : > { %v1347_v47 = vpop.eup %1346 }
 0x2f7   : > { %1228 = vmatmul.msk.f32.vlgmr.msra.gmra.mxu0 %vm647_vm1, %v1347_v47  ;;  %v654_v48 = vsel %vm647_vm1, %v1347_v47, 0.0 }
 0x2f8   : > { %655 = vadd.xlane.f32.xlu2 %v654_v48  ;;  %866 = vmatpush.msra.mxu0 %v1836_v7 }
 0x300   : > { %796 = vadd.xlane.f32.xlu2 %v795_v49 }
 0x318   : > { %v686_v50 = vpop.xlane.xlu2 %685  ;;  %v819_v28 = vpop.f32.mrf.mxu2 }
 0x319   : > { %v690_v51 = vsub.f32 %v631_v13, %v686_v50 }
 0x31b   : > { %v692_v52 = vmul.f32 1.442695, %v690_v51 }
 0x31d   : > { %1348 = vpow2.f32 %v692_v52 }
 0x320   : > { %v689_v53 = vpop.xlane.xlu2 %688 }
 0x321   : > { %v691_v54 = vsub.f32 %v632_v33, %v689_v53 }
 0x323   : > { %v1349_v55 = vpop.eup %1348  ;;  %v694_v56 = vmul.f32 1.442695, %v691_v54 }
 0x324   : > { %1229 = vmatmul.msk.f32.vlgmr.msrb.gmra.mxu0 %vm683_vm2, %v1349_v55  ;;  %v696_v9 = vsel %vm683_vm2, %v1349_v55, 0.0 }
 0x325   : > { %1350 = vpow2.f32 %v694_v56 }
 0x328   : > { %v933_v57 = vpop.xlane.xlu2 %932 }
 0x329   : > { %v934_v58 = vsub.f32 %v896_v23, %v933_v57 }
 0x32b   : > { %v1351_v59 = vpop.eup %1350  ;;  %v935_v60 = vmul.f32 1.442695, %v934_v58 }
 0x32c   : > { %1230 = vmatmul.msk.f32.gmra.mxu0 %vm683_vm2, %v1351_v59  ;;  %v699_v16 = vsel %vm683_vm2, %v1351_v59, 0.0 }
 0x32d   : > { %1352 = vpow2.f32 %v935_v60 }
 0x32e   : > { %v827_v7 = vpop.xlane.xlu1 %826 }
 0x32f   : > { %v831_v61 = vsub.f32 %v773_v36, %v827_v7 }
 0x331   : > { %v833_v62 = vmul.f32 1.442695, %v831_v61 }
 0x333   : > { %v1353_v63 = vpop.eup %1352  ;;  %1354 = vpow2.f32 %v833_v62 }
 0x334   : > { %1237 = vmatmul.msk.f32.vlgmr.msrb.gmra.mxu2 %vm647_vm1, %v1353_v63  ;;  %v937_v0 = vsel %vm647_vm1, %v1353_v63, 0.0 }
 0x335   : > { %938 = vadd.xlane.f32.xlu2 %v937_v0 }
 0x336   : > { %v830_v1 = vpop.xlane.xlu2 %829 }
 0x337   : > { %v832_v2 = vsub.f32 %v774_v38, %v830_v1 }
 0x339   : > { %v1355_v3 = vpop.eup %1354  ;;  %v835_v8 = vmul.f32 1.442695, %v832_v2 }
 0x33a   : > { %1233 = vmatmul.msk.f32.vlgmr.msra.gmra.mxu0 %vm683_vm2, %v1355_v3  ;;  %v837_v6 = vsel %vm683_vm2, %v1355_v3, 0.0 }
 0x33b   : > { %1356 = vpow2.f32 %v835_v8 }
 0x33d   : > { %697 = vadd.xlane.f32.xlu2 %v696_v9 }
 0x33e   : > { %v969_v10 = vpop.xlane.xlu2 %968 }
 0x33f   : > { %v973_v11 = vsub.f32 %v915_v40, %v969_v10 }
 0x341   : > { %v1357_v14 = vpop.eup %1356  ;;  %v975_v15 = vmul.f32 1.442695, %v973_v11 }
 0x342   : > { %1234 = vmatmul.msk.f32.gmra.mxu0 %vm683_vm2, %v1357_v14  ;;  %v840_v21 = vsel %vm683_vm2, %v1357_v14, 0.0 }
 0x343   : > { %1358 = vpow2.f32 %v975_v15 }
 0x345   : > { %700 = vadd.xlane.f32.xlu2 %v699_v16 }
 0x346   : > { %v972_v17 = vpop.xlane.xlu2 %971 }
 0x347   : > { %v974_v19 = vsub.f32 %v916_v42, %v972_v17 }
 0x349   : > { %v1359_v4 = vpop.eup %1358  ;;  %v977_v5 = vmul.f32 1.442695, %v974_v19 }
 0x34a   : > { %1239 = vmatmul.msk.f32.vlgmr.msra.gmra.mxu1 %vm683_vm2, %v1359_v4  ;;  %v979_v22 = vsel %vm683_vm2, %v1359_v4, 0.0 }
 0x34b   : > { %1360 = vpow2.f32 %v977_v5 }
 0x34d   : > { %838 = vadd.xlane.f32.xlu2 %v837_v6 }
 0x351   : > { %v1361_v20 = vpop.eup %1360 }
 0x352   : > { %1240 = vmatmul.msk.f32.gmra.mxu1 %vm683_vm2, %v1361_v20  ;;  %v982_v24 = vsel %vm683_vm2, %v1361_v20, 0.0 }
 0x355   : > { %841 = vadd.xlane.f32.xlu2 %v840_v21 }
 0x35d   : > { %980 = vadd.xlane.f32.xlu2 %v979_v22 }
 0x365   : > { %983 = vadd.xlane.f32.xlu2 %v982_v24 }
 0x36b   : > { %v656_v26 = vpop.xlane.xlu2 %655 }
 0x36c   : > { %1362 = vrcp.f32 %v656_v26 }
 0x372   : > { %v1363_v12 = vpop.eup %1362 }
 0x373   : > { %v797_v18 = vpop.xlane.xlu2 %796 }
 0x374   : > { %1364 = vrcp.f32 %v797_v18  ;;  %v678_v25 = vpop.f32.mrf.mxu0 }
 0x375   : > { %v681_v23 = vmul.f32 %v1363_v12, %v678_v25 }
 0x377   : > { %682 = vst.msk [vmem:[%s378_s4] sm:$0xff] %vm424_vm0, %v681_v23 }
 0x37a   : > { %v1365_v27 = vpop.eup %1364 }
 0x37b   : > { %v822_v29 = vmul.f32 %v1365_v27, %v819_v28 }
 0x37d   : > { %1232 = vst.msk [vmem:[%s378_s4 + $0x8] sm:$0xff] %vm424_vm0, %v822_v29 }
 0x3a1   : > { %v727_v13 = vpop.f32.mrf.mxu0 }
 0x3a8   : > { %v939_v30 = vpop.xlane.xlu2 %938 }
 0x3a9   : > { %1366 = vrcp.f32 %v939_v30 }
 0x3af   : > { %v1367_v32 = vpop.eup %1366 }
 0x3b0   : > { %v698_v31 = vpop.xlane.xlu2 %697 }
 0x3b1   : > { %1368 = vrcp.f32 %v698_v31 }
 0x3b7   : > { %v1369_v33 = vpop.eup %1368  ;;  %v961_v34 = vpop.f32.mrf.mxu2 }
 0x3b8   : > { %v733_v35 = vmul.f32 %v1369_v33, %v727_v13  ;;  %v964_v36 = vmul.f32 %v1367_v32, %v961_v34  ;;  %v701_v37 = vpop.xlane.xlu2 %700 }
 0x3b9   : > { %1370 = vrcp.f32 %v701_v37 }
 0x3ba   : > { %735 = vst.msk [vmem:[%s1921_s11] sm:$0xff] %vm424_vm0, %v733_v35 }
 0x3bb   : > { %1238 = vst.msk [vmem:[%s378_s4 + $0x10] sm:$0xff] %vm424_vm0, %v964_v36 }
 0x3bc   : > { %1527 = shalt.err (!%p1524_p2)
}
 0x3bd   : > { %s1616_s30 = smov 128   ;;  %s1617_s21 = smov 8   ;;  %v730_v38 = vpop.f32.mrf.mxu0 }
 0x3be   : > { %1272 = dma.vmem_to_hbm [thread:$0]  (%p1730_p3), %s1917_s19, 384, %s1042_s26, %s1022_s29, %s1616_s30, %s1616_s30, %s1617_s21  }
 0x3bf   : > { %v1371_v39 = vpop.eup %1370  ;;  %s1255_s23 = smul.u32 48, %s1679_s28  ;;  %s1057_s13 = sshll.u32 %s1921_s11, 4  ;;  %s1058_s13 = int_to_ptr.vmem [resolvable:$true] %s1057_s13 }
 0x3c0   : > { %v734_v40 = vmul.f32 %v1371_v39, %v730_v38  ;;  %v839_v41 = vpop.xlane.xlu2 %838  ;;  %s1027_s28 = scalar_lea.sflag [#allocation12], %s1792_s10  ;;  %s1548_s8 = scalar_lea.hbm %s1995_s7, 96 }
 0x3c1   : > { %1372 = vrcp.f32 %v839_v41  ;;  %s1056_s14 = scalar_lea.hbm %s1995_s7, %s1255_s23 }
 0x3c2   : > { %736 = vst.msk [vmem:[%s1921_s11 + $0x8] sm:$0xff] %vm424_vm0, %v734_v40  ;;  %s1059_s17 = sshll.u32 %s1056_s14, 4  ;;  %s1060_s17 = int_to_ptr.hbm [resolvable:$true] %s1059_s17 }
 0x3c3   : > { %s1542_s18 = sshra.s32 %s1060_s17, 4  ;;  %s1543_s18 = int_to_ptr.hbm [resolvable:$true] %s1542_s18 }
 0x3c4   : > { %s1544_s19 = scalar_lea.hbm %s1543_s18, 48  ;;  %p1549_p5 = scmp.lt.s32.totalorder %s1543_s18, %s1995_s7 }
 0x3c5   : > { %v868_v42 = vpop.f32.mrf.mxu0  ;;  %p1545_p12 = scmp.ne.s32.totalorder %s1543_s18, %s1544_s19  ;;  %p1550_p7 = scmp.lt.s32.totalorder %s1548_s8, %s1544_s19 }
 0x3c7   : > { %v1373_v43 = vpop.eup %1372  ;;  %v1010_v50 = vpop.f32.mrf.mxu1  ;;  %p1546_p13 = pnand %p1545_p12, %p1730_p3  ;;  %p1551_p1 = por %p1550_p7, %p1549_p5 }
 0x3c8   : > { %v874_v44 = vmul.f32 %v1373_v43, %v868_v42  ;;  %v842_v45 = vpop.xlane.xlu2 %841 }
 0x3c9   : > { %1374 = vrcp.f32 %v842_v45  ;;  %p1547_p0 = pneg %p1546_p13 }
 0x3ca   : > { %1235 = vst.msk [vmem:[%s1921_s11 + $0x10] sm:$0xff] %vm424_vm0, %v874_v44 }
 0x3cb   : > { %p1552_p4 = pnand %p1551_p1, %p1547_p0 }
 0x3cd   : > { %v871_v47 = vpop.f32.mrf.mxu0 }
 0x3cf   : > { %v1375_v46 = vpop.eup %1374  ;;  %v1013_v55 = vpop.f32.mrf.mxu1 }
 0x3d0   : > { %v875_v48 = vmul.f32 %v1375_v46, %v871_v47  ;;  %v981_v49 = vpop.xlane.xlu2 %980 }
 0x3d1   : > { %1376 = vrcp.f32 %v981_v49 }
 0x3d2   : > { %1236 = vst.msk [vmem:[%s1921_s11 + $0x18] sm:$0xff] %vm424_vm0, %v875_v48 }
 0x3d7   : > { %v1377_v51 = vpop.eup %1376 }
 0x3d8   : > { %v1016_v52 = vmul.f32 %v1377_v51, %v1010_v50  ;;  %v984_v53 = vpop.xlane.xlu2 %983 }
 0x3d9   : > { %1378 = vrcp.f32 %v984_v53 }
 0x3da   : > { %1241 = vst.msk [vmem:[%s1921_s11 + $0x20] sm:$0xff] %vm424_vm0, %v1016_v52 }
 0x3df   : > { %v1379_v54 = vpop.eup %1378 }
 0x3e0   : > { %v1017_v56 = vmul.f32 %v1379_v54, %v1013_v55 }
 0x3e2   : > { %1242 = vst.msk [vmem:[%s1921_s11 + $0x28] sm:$0xff] %vm424_vm0, %v1017_v56 }
 0x3e3   : > { %1555 = shalt.err (!%p1552_p4)
}
 0x3e4   : > { %1273 = dma.vmem_to_hbm [thread:$0]  (%p1730_p3), %s1058_s13, 768, %s1060_s17, %s1027_s28, %s1616_s30, %s1616_s30, %s1617_s21  }
 0x3e5 PF: > { %s1074_s11 = sand.u32 1, %s1598_s24   ;;  %p2023_p8 = scmp.ge.s32.totalorder %s1610_s27, 2 }
 0x3e6   : > { %s1075_s0 = scalar_lea.sflag [#allocation4], %s1074_s11 }
 0x3e7   : > { %p1291_p9 = pnand %p2023_p8, %p1693_p6 }
 0x3e9   : > { %p1292_p10 = pneg %p1291_p9 }
 0x3eb   : > { %1589 = dma.done.wait (%p1292_p10), %s1075_s0, 384  }
 0x3ec   : > { %1591 = vsyncadd (%p1292_p10), %s1075_s0, 4294966912  ;;  %s1085_s15 = scalar_lea.sflag [#allocation12], %s1074_s11 }
 0x3ed   : > { %1593 = dma.done.wait (%p1292_p10), %s1085_s15, 768  }
 0x3ee   : > { %1595 = vsyncadd (%p1292_p10), %s1085_s15, 4294966528  ;;  %s2024_s27 = sld [smem:[#allocation21_spill]]  ;;  %s2027_s24 = smov %s1602_s25 }
 0x3ef   : > { %s2025_s9 = sld [smem:[#allocation19_spill]] }
 0x3f0   : > { %s2026_s26 = sld [smem:[#allocation22_spill]] }
 0x3f4   : > { %p28_p3 = scmp.ge.s32.totalorder %s2024_s27, 4  }
 0x3f5   : > { %s2028_s25 = smov %s2025_s9 }
 0x3f6   :  { %30 = sbr.rel (!%p28_p3) target bundleno = 14 (0xe), region = 131 }
 0x3fb   :  { %1091 = vsyncpa [#allocation3], 1 }
 0x3fc   :  { %1093 = vsyncpa [#allocation3 + $0x1], 1 }
 0x3fd   :  { %1094 = vsyncpa [#allocation6], 1 }
 0x3fe   :  { %1096 = vsyncpa [#allocation6 + $0x1], 1 }
 0x3ff   :  { %1097 = vsyncpa [#allocation9], 1 }
 0x400   :  { %1098 = vsyncpa [#allocation4], 1 }
 0x401   :  { %1100 = vsyncpa [#allocation4 + $0x1], 1 }
 0x402   :  { %1101 = vsyncpa [#allocation12], 1 }
 0x403   :  { %1103 = vsyncpa [#allocation12 + $0x1], 1 }

</bundles_post_ra>
